<compile_context>
chip_gen: v5e
topology: v5e:2x2
jax: 0.10.0
libtpu: 0.0.40
codegen_flags: <defaults>
</compile_context>

<pallas_src>
import math

import jax
import jax.numpy as jnp
from jax.experimental import pallas as pl
from jax.experimental.pallas import tpu as pltpu


def _round_up(x: int, m: int) -> int:
    return ((x + m - 1) // m) * m


def _round_down(x: int, m: int) -> int:
    return (x // m) * m


def _aff_kernel(x_ref, w_ref, b_ref, o_ref):
    # x_ref: (tm, Cw); w_ref: (Cw, Cw); b_ref: (1, Cw) broadcasts over rows.
    acc = jnp.dot(x_ref[...], w_ref[...], preferred_element_type=jnp.float32)
    o_ref[...] = (acc + b_ref[...]).astype(o_ref.dtype)


def _fold_params(alpha, beta, color, channel_first, C):
    # Tiny [C, C] host-side work.  If alpha/beta/color are static across calls,
    # this (and the kron below) can be cached / jitted once by the caller.
    alpha_r = alpha.reshape(C).astype(jnp.float32)
    beta_r = beta.reshape(C).astype(jnp.float32)
    colorT = color.astype(jnp.float32).T  # tensordot over last dims == x @ color.T
    if channel_first:
        W = colorT * alpha_r[None, :]      # scale columns
        b = beta_r
    else:
        W = alpha_r[:, None] * colorT      # scale rows
        b = beta_r @ colorT
    return W, b


def aff_channel(x, alpha, beta, color, *, channel_first=True, tm=None):
    """x: [B, N, C]; alpha, beta: [1, 1, C]; color: [C, C]."""
    B, N, C = x.shape
    dtype = x.dtype
    itemsize = jnp.dtype(dtype).itemsize
    M = B * N

    W, b = _fold_params(alpha, beta, color, channel_first, C)

    # --- Lane-dense fold: pack f rows per lane group so Cw is a multiple of 128.
    # Generalized to C that does not divide 128 (e.g. the real IAT C=3 -> Cw=384).
    lcm = C * 128 // math.gcd(C, 128)
    f_ideal = lcm // C if (C < 128 and lcm <= 512) else 1
    f = math.gcd(f_ideal, M) if M > 0 else 1   # keep the reshape a free view
    Cw = f * C
    Mp = M // f

    xp = x.reshape(Mp, Cw)                     # contiguous: no copy

    if f > 1:
        W_big = jnp.kron(jnp.eye(f, dtype=jnp.float32), W)   # block-diag (Cw, Cw)
        b_big = jnp.tile(b, f).reshape(1, Cw)
    else:
        W_big = W
        b_big = b.reshape(1, Cw)
    W_big = W_big.astype(dtype)
    b_big = b_big.astype(jnp.float32)

    # --- Row tile: ~2 MiB of x per step (tm=4096 at Cw=128, f32), multiple of 8.
    if tm is None:
        tm_budget = max(512, _round_down((2 << 20) // (Cw * itemsize), 8))
    else:
        tm_budget = max(8, _round_up(int(tm), 8))

    if Mp <= 8:
        tm_eff = Mp                            # single full-extent block
    else:
        half = _round_up((Mp + 1) // 2, 8)     # keep >=2 blocks (v7x megacore)
        tm_eff = max(8, min(tm_budget, half))

    grid_m = pl.cdiv(Mp, tm_eff)               # partial last block handled by Pallas

    # Right-sized VMEM request: double-buffered x/out tiles + resident W/bias + slack.
    vmem_need = 2 * (2 * tm_eff * Cw * itemsize) + 2 * (Cw * Cw * itemsize + Cw * 4)
    vmem_limit = int(min(vmem_need + (4 << 20), 32 << 20))

    cost = pl.CostEstimate(
        flops=2 * Mp * Cw * Cw,
        transcendentals=0,
        bytes_accessed=2 * Mp * Cw * itemsize + Cw * Cw * itemsize + Cw * 4,
    )

    out_p = pl.pallas_call(
        _aff_kernel,
        out_shape=jax.ShapeDtypeStruct((Mp, Cw), dtype),
        grid_spec=pltpu.PrefetchScalarGridSpec(
            num_scalar_prefetch=0,
            grid=(grid_m,),
            in_specs=[
                pl.BlockSpec((tm_eff, Cw), lambda i: (i, 0)),   # x tile (streamed)
                pl.BlockSpec((Cw, Cw), lambda i: (0, 0)),       # folded W (resident)
                pl.BlockSpec((1, Cw), lambda i: (0, 0)),        # folded bias (resident)
            ],
            out_specs=pl.BlockSpec((tm_eff, Cw), lambda i: (i, 0)),
        ),
        compiler_params=pltpu.CompilerParams(
            dimension_semantics=("parallel",),
            vmem_limit_bytes=vmem_limit,
        ),
        cost_estimate=cost,
    )(xp, W_big, b_big)

    # Free views back to the original logical shape (f divides M exactly).
    return out_p.reshape(M, C).reshape(B, N, C)


def aff_channel_ref(x, alpha, beta, color, *, channel_first=True):
    if channel_first:
        x1 = jnp.tensordot(x, color, axes=[[-1], [-1]])
        return x1 * alpha + beta
    else:
        x1 = x * alpha + beta
        return jnp.tensordot(x1, color, axes=[[-1], [-1]])


def _make_params(key, dim):
    k_a, k_b, k_c = jax.random.split(key, 3)
    alpha = jnp.ones((1, 1, dim), jnp.float32) \
        + 0.1 * jax.random.normal(k_a, (1, 1, dim), dtype=jnp.float32)
    beta = jnp.zeros((1, 1, dim), jnp.float32) \
        + 0.1 * jax.random.normal(k_b, (1, 1, dim), dtype=jnp.float32)
    color = jnp.eye(dim, dtype=jnp.float32) \
        + 0.05 * jax.random.normal(k_c, (dim, dim), dtype=jnp.float32)
    return alpha, beta, color


if __name__ == "__main__":
    key = jax.random.PRNGKey(0)

    # (B, N, dim): aligned case, ragged-M case (partial blocks / smaller fold),
    # and the real IAT-style tiny color matrix (C=3 -> 384-lane fold).
    cases = [
        (2, 64, 32),   # M=128, f=4, Cw=128
        (2, 61, 32),   # M=122, f=2, Cw=64, partial last row block
        (2, 64, 3),    # M=128, f=128, Cw=384
    ]

    for idx, (B, N, dim) in enumerate(cases):
        k_case = jax.random.fold_in(key, idx)
        k_x, k_p = jax.random.split(k_case)
        x = jax.random.normal(k_x, (B, N, dim), dtype=jnp.float32)
        alpha, beta, color = _make_params(k_p, dim)

        for channel_first in (True, False):
            out = aff_channel(x, alpha, beta, color, channel_first=channel_first)
            out = jax.block_until_ready(out)
            ref = aff_channel_ref(x, alpha, beta, color, channel_first=channel_first)
            assert out.shape == ref.shape
            assert jnp.allclose(out, ref, atol=1e-5, rtol=1e-5), \
                f"mismatch (shape={(B, N, dim)}, channel_first={channel_first})"

    print("KERNEL_OK")
</pallas_src>

<mosaic_0001>
module attributes {stable_mosaic.version = 11 : i64} {
  func.func @_aff_kernel(%arg0: i32, %arg1: memref<16x128xf32, #tpu.memory_space<vmem>>, %arg2: memref<128x128xf32, #tpu.memory_space<vmem>>, %arg3: memref<1x128xf32, #tpu.memory_space<vmem>>, %arg4: memref<16x128xf32, #tpu.memory_space<vmem>>) attributes {dimension_semantics = [#tpu.dimension_semantics<parallel>], iteration_bounds = array<i64: 2>, scalar_prefetch = 0 : i64, scratch_operands = 0 : i64, tpu.core_type = #tpu.core_type<tc>, window_params = [{transform_indices = @transform_0, window_bounds = array<i64: 16, 128>}, {pipeline_mode = #tpu.pipeline_mode<synchronous>, transform_indices = @transform_1, window_bounds = array<i64: 128, 128>}, {pipeline_mode = #tpu.pipeline_mode<synchronous>, transform_indices = @transform_2, window_bounds = array<i64: 1, 128>}, {transform_indices = @transform_3, window_bounds = array<i64: 16, 128>}]} {
    %c0 = arith.constant 0 : index
    %c0_0 = arith.constant 0 : index
    %0 = vector.load %arg1[%c0, %c0_0] : memref<16x128xf32, #tpu.memory_space<vmem>>, vector<16x128xf32>
    %c0_1 = arith.constant 0 : index
    %c0_2 = arith.constant 0 : index
    %1 = vector.load %arg2[%c0_1, %c0_2] : memref<128x128xf32, #tpu.memory_space<vmem>>, vector<128x128xf32>
    %cst = arith.constant dense<0.000000e+00> : vector<16x128xf32>
    %2 = tpu.matmul %0, %1, %cst {dimension_numbers = #tpu.dot_dimension_numbers<[1], [0], [0], [1], [0, 0, 1, 1], [], []>} : vector<16x128xf32>, vector<128x128xf32>, vector<16x128xf32> -> vector<16x128xf32>
    %c0_3 = arith.constant 0 : index
    %c0_4 = arith.constant 0 : index
    %3 = vector.load %arg3[%c0_3, %c0_4] : memref<1x128xf32, #tpu.memory_space<vmem>>, vector<1x128xf32>
    %4 = vector.broadcast %3 : vector<1x128xf32> to vector<16x128xf32>
    %5 = arith.addf %2, %4 : vector<16x128xf32>
    %c0_5 = arith.constant 0 : index
    %c0_6 = arith.constant 0 : index
    %6 = vector.load %arg4[%c0_5, %c0_6] : memref<16x128xf32, #tpu.memory_space<vmem>>, vector<16x128xf32>
    tpu.vector_store %arg4[%c0_5, %c0_6], %5 {strides = array<i32>} : memref<16x128xf32, #tpu.memory_space<vmem>>, vector<16x128xf32>,
    return
  }
  func.func @transform_0(%arg0: i32) -> (i32, i32) {
    %c0_i32 = arith.constant 0 : i32
    %c0_i32_0 = arith.constant 0 : i32
    return %arg0, %c0_i32 : i32, i32
  }
  func.func @transform_1(%arg0: i32) -> (i32, i32) {
    %c0_i32 = arith.constant 0 : i32
    %c0_i32_0 = arith.constant 0 : i32
    %c0_i32_1 = arith.constant 0 : i32
    return %c0_i32, %c0_i32_0 : i32, i32
  }
  func.func @transform_2(%arg0: i32) -> (i32, i32) {
    %c0_i32 = arith.constant 0 : i32
    %c0_i32_0 = arith.constant 0 : i32
    %c0_i32_1 = arith.constant 0 : i32
    return %c0_i32, %c0_i32_0 : i32, i32
  }
  func.func @transform_3(%arg0: i32) -> (i32, i32) {
    %c0_i32 = arith.constant 0 : i32
    %c0_i32_0 = arith.constant 0 : i32
    return %arg0, %c0_i32 : i32, i32
  }
}

</mosaic_0001>

<bundles_post_ra>
// kernel: tpu_custom_call.1
= control target key start
LH: loop header
LB: loop body
LE: loop exit
PB: predicated region body
PF: predicated region fallthrough
CT: control target
= control target key end

     0   :  { %8 = vsyncpa [#allocation3], 0  ;;  %s764_s0 = inlined_call_operand.hbm [shape: f32[32,128], index: 0, kind: input, shape index: {}]   ;;  %s765_s1 = inlined_call_operand.hbm [shape: f32[128,128], index: 1, kind: input, shape index: {}]   ;;  %s766_s2 = inlined_call_operand.vmem [shape: f32[1,128], index: 2, kind: input, shape index: {}]   ;;  %s767_s3 = inlined_call_operand.hbm [shape: f32[32,128], index: 3, kind: output, shape index: {}]  }
   0x1   :  { %10 = vsyncpa [#allocation3 + $0x1], 0 }
   0x2   :  { %11 = vsyncpa [#allocation6], 0 }
   0x3   :  { %12 = vsyncpa [#allocation4], 0 }
   0x4   :  { %14 = vsyncpa [#allocation4 + $0x1], 0  ;;  %s609_s12 = smov 0   ;;  %s611_s13 = smov 0  }
   0x5   :  { %s613_s14 = smov 0   ;;  %s615_s15 = smov 0  }
   0x6 LB: > { %s630_s16 = sadd.s32 4294967295, %s582_s15   ;;  %s356_s17 = sadd.s32 4294967294, %s582_s15   ;;  %s582_s15 = sphi %s615_s15, %s777_s15   ;;  %s578_s14 = sphi %s613_s14, %s776_s14   ;;  %s574_s13 = sphi %s611_s13, %s775_s13   ;;  %s570_s12 = sphi %s609_s12, %s774_s12  }
   0x7   : > { %p40_p0 = scmp.ne.s32.totalorder %s574_s13, %s570_s12  ;;  %p41_p1 = scmp.eq.s32.totalorder %s630_s16, 0 }
   0x8   : > { %p106_p2 = scmp.eq.s32.totalorder %s630_s16, 1  ;;  %p112_p3 = scmp.eq.s32.totalorder %s356_s17, 1 }
   0x9   : > { %p639_p4 = por %p41_p1, %p40_p0  ;;  %p357_p5 = scmp.ge.s32.totalorder %s582_s15, 1 }
   0xa   : > { %p644_p6 = por %p112_p3, %p40_p0  ;;  %p119_p7 = scmp.lt.s32.totalorder %s582_s15, 3 }
   0xb   : > { %s130_s22 = sshll.u32 %s765_s1, 4  ;;  %s584_s24 = smov [#allocation5]   ;;  %s131_s22 = int_to_ptr.hbm [resolvable:$true] %s130_s22 }
   0xc   : > { %p652_p8 = pnand %p357_p5, %p119_p7  ;;  %s132_s25 = sshll.u32 %s584_s24, 4  ;;  %s133_s25 = int_to_ptr.vmem [resolvable:$true] %s132_s25 }
   0xd   : > { %s662_s26 = sadd.s32 1, %s582_s15   ;;  %s585_s27 = smov 128  }
   0xe   : > { %p398_p9 = pneg %p652_p8  ;;  %s586_s28 = smov 8  }
   0xf   : > { %s24_s29 = ssub.s32 %s582_s15, %s662_s26  ;;  %s27_s30 = sadd.s32 1, %s578_s14 }
  0x10   : > { %p399_p10 = pnand %p398_p9, %p41_p1  ;;  %p25_p12 = scmp.eq.s32.totalorder %s24_s29, 0 }
  0x11   : > { %p34_p13 = scmp.ne.s32.totalorder %s578_s14, %s574_s13  ;;  %p35_p0 = scmp.eq.s32.totalorder %s582_s15, 0 }
  0x12   : > { %401 = dma.hbm_to_vmem [thread:$0]  (!%p399_p10), %s131_s22, 2048, %s133_s25, [#allocation6], %s585_s27, %s585_s27, %s586_s28  }
  0x13   : > { %s674_s4 = scalar_select %p25_p12, %s578_s14, %s27_s30  }
  0x14   : > { %p678_p3 = por %p106_p2, %p34_p13  ;;  %p411_p5 = scmp.lt.s32.totalorder %s582_s15, 2 }
  0x15   : > { %s149_s6 = sand.u32 1, %s578_s14   ;;  %s372_s7 = sshll.u32 %s582_s15, 4 }
  0x16   : > { %p36_p7 = por %p35_p0, %p34_p13  ;;  %s360_s8 = sshll.u32 %s149_s6, 4 }
  0x17   : > { %s158_s11 = scalar_lea.hbm %s764_s0, %s372_s7  ;;  %s153_s20 = scalar_lea.vmem [#allocation2], %s360_s8 }
  0x18   : > { %s159_s17 = sshll.u32 %s158_s11, 4  ;;  %s161_s21 = sshll.u32 %s153_s20, 4  ;;  %s160_s17 = int_to_ptr.hbm [resolvable:$true] %s159_s17  ;;  %s162_s21 = int_to_ptr.vmem [resolvable:$true] %s161_s21 }
  0x19   : > { %p688_p9 = pnand %p411_p5, %p36_p7  ;;  %s150_s24 = scalar_lea.sflag [#allocation3], %s149_s6 }
  0x1a   : > { %s482_s25 = sshra.s32 %s160_s17, 4  ;;  %s489_s8 = scalar_lea.hbm %s764_s0, 32  ;;  %s483_s25 = int_to_ptr.hbm [resolvable:$true] %s482_s25 }
  0x1b   : > { %s484_s29 = scalar_lea.hbm %s483_s25, 16  ;;  %p486_p10 = pneg %p688_p9 }
  0x1c   : > { %p485_p2 = scmp.ne.s32.totalorder %s483_s25, %s484_s29  ;;  %p490_p0 = scmp.lt.s32.totalorder %s483_s25, %s764_s0 }
  0x1d   : > { %p491_p5 = scmp.lt.s32.totalorder %s489_s8, %s484_s29 }
  0x1e   : > { %p487_p12 = pnand %p486_p10, %p485_p2 }
  0x1f   : > { %p492_p7 = por %p491_p5, %p490_p0 }
  0x20   : > { %p488_p13 = pneg %p487_p12 }
  0x22   : > { %p493_p11 = pnand %p492_p7, %p488_p13 }
  0x24   : > { %496 = shalt.err (!%p493_p11)
}
  0x25   : > { %405 = dma.hbm_to_vmem [thread:$0]  (!%p688_p9), %s160_s17, 256, %s162_s21, %s150_s24, %s585_s27, %s585_s27, %s586_s28  }
  0x26   : > { %173 = sbr.rel (%p652_p8) target bundleno = 211 (0xd3), region = 32  ;;  %s708_s6 = sand.u32 (!%p652_p8), 1, %s574_s13  }
  0x27   : > { %s364_s11 = sshll.u32 (!%p652_p8), %s708_s6, 4  ;;  %s176_s20 = scalar_lea.sflag (!%p652_p8), [#allocation3], %s708_s6 }
  0x28   : > { %s714_s25 = scalar_lea.vmem (!%p652_p8), [#allocation2], %s364_s11 }
  0x2b   : > { %557 = dma.done.wait (%p639_p4), %s176_s20, 256  }
  0x2c   : > { %559 = vsyncadd (%p639_p4), %s176_s20, 4294967040 }
  0x2d   : > { %561 = dma.done.wait (%p41_p1), [#allocation6], 2048  }
  0x2e   : > { %563 = vsyncadd (%p41_p1), [#allocation6], 4294965248  ;;  %v227_v0 = vld [vmem:[#allocation5 + $0x78] sm:$0xff]  ;;  %v226_v1 = vld [vmem:[#allocation5 + $0x70] sm:$0xff]  ;;  %s373_s18 = sshll.u32 %s630_s16, 4  ;;  %s207_s22 = scalar_lea.vmem [#allocation7], %s364_s11 }
  0x2f   : > { %232 = vmatpush.msra.mxu0 %v227_v0  ;;  %374 = vmatpush.msra.mxu1 %v227_v0  ;;  %v225_v2 = vld [vmem:[#allocation5 + $0x68] sm:$0xff]  ;;  %v224_v3 = vld [vmem:[#allocation5 + $0x60] sm:$0xff]  ;;  %v223_v4 = vld [vmem:[#allocation5 + $0x58] sm:$0xff]  ;;  %s269_s28 = scalar_lea.hbm %s767_s3, %s373_s18  ;;  %s270_s24 = sshll.u32 %s207_s22, 4  ;;  %s271_s24 = int_to_ptr.vmem [resolvable:$true] %s270_s24 }
  0x30   : > { %v222_v5 = vld [vmem:[#allocation5 + $0x50] sm:$0xff]  ;;  %v221_v6 = vld [vmem:[#allocation5 + $0x48] sm:$0xff]  ;;  %v220_v7 = vld [vmem:[#allocation5 + $0x40] sm:$0xff]  ;;  %s272_s29 = sshll.u32 %s269_s28, 4  ;;  %s258_s16 = scalar_lea.sflag [#allocation4], %s708_s6  ;;  %s273_s29 = int_to_ptr.hbm [resolvable:$true] %s272_s29 }
  0x31   : > { %233 = vmatpush.msra.mxu0 %v226_v1  ;;  %375 = vmatpush.msra.mxu1 %v226_v1  ;;  %v219_v8 = vld [vmem:[#allocation5 + $0x38] sm:$0xff]  ;;  %v218_v9 = vld [vmem:[#allocation5 + $0x30] sm:$0xff]  ;;  %v217_v10 = vld [vmem:[#allocation5 + $0x28] sm:$0xff]  ;;  %s526_s30 = sshra.s32 %s273_s29, 4  ;;  %s532_s10 = scalar_lea.hbm %s767_s3, 32  ;;  %s527_s30 = int_to_ptr.hbm [resolvable:$true] %s526_s30 }
  0x32   : > { %v216_v11 = vld [vmem:[#allocation5 + $0x20] sm:$0xff]  ;;  %v215_v12 = vld [vmem:[#allocation5 + $0x18] sm:$0xff]  ;;  %v214_v13 = vld [vmem:[#allocation5 + $0x10] sm:$0xff]  ;;  %s528_s7 = scalar_lea.hbm %s527_s30, 16  ;;  %p533_p11 = scmp.lt.s32.totalorder %s527_s30, %s767_s3 }
  0x33   : > { %234 = vmatpush.msra.mxu0 %v225_v2  ;;  %376 = vmatpush.msra.mxu1 %v225_v2  ;;  %v213_v14 = vld [vmem:[#allocation5 + $0x8] sm:$0xff]  ;;  %v212_v15 = vld [vmem:[#allocation5] sm:$0xff]  ;;  %p529_p1 = scmp.ne.s32.totalorder %s527_s30, %s528_s7  ;;  %p534_p9 = scmp.lt.s32.totalorder %s532_s10, %s528_s7 }
  0x34   : > { %v210_v16 = vld [vmem:[%s714_s25] sm:$0xff]  ;;  %v211_v17 = vld [vmem:[%s714_s25 + $0x8] sm:$0xff] }
  0x35   : > { %235 = vmatpush.msra.mxu0 %v224_v3  ;;  %377 = vmatpush.msra.mxu1 %v224_v3  ;;  %v451_v18 = vld [vmem:[%s766_s2] ss:$0 sm:$0xff]  ;;  %p530_p4 = pnand %p529_p1, %p678_p3  ;;  %p535_p2 = por %p534_p9, %p533_p11 }
  0x37   : > { %236 = vmatpush.msra.mxu0 %v223_v4  ;;  %378 = vmatpush.msra.mxu1 %v223_v4  ;;  %p531_p8 = pneg %p530_p4 }
  0x39   : > { %237 = vmatpush.msra.mxu0 %v222_v5  ;;  %379 = vmatpush.msra.mxu1 %v222_v5  ;;  %p536_p10 = pnand %p535_p2, %p531_p8 }
  0x3b   : > { %238 = vmatpush.msra.mxu0 %v221_v6  ;;  %380 = vmatpush.msra.mxu1 %v221_v6 }
  0x3d   : > { %239 = vmatpush.msra.mxu0 %v220_v7  ;;  %381 = vmatpush.msra.mxu1 %v220_v7 }
  0x3f   : > { %240 = vmatpush.msra.mxu0 %v219_v8  ;;  %382 = vmatpush.msra.mxu1 %v219_v8 }
  0x41   : > { %241 = vmatpush.msra.mxu0 %v218_v9  ;;  %383 = vmatpush.msra.mxu1 %v218_v9 }
  0x43   : > { %242 = vmatpush.msra.mxu0 %v217_v10  ;;  %384 = vmatpush.msra.mxu1 %v217_v10 }
  0x45   : > { %243 = vmatpush.msra.mxu0 %v216_v11  ;;  %385 = vmatpush.msra.mxu1 %v216_v11 }
  0x47   : > { %244 = vmatpush.msra.mxu0 %v215_v12  ;;  %386 = vmatpush.msra.mxu1 %v215_v12 }
  0x49   : > { %245 = vmatpush.msra.mxu0 %v214_v13  ;;  %387 = vmatpush.msra.mxu1 %v214_v13 }
  0x4b   : > { %246 = vmatpush.msra.mxu0 %v213_v14  ;;  %388 = vmatpush.msra.mxu1 %v213_v14 }
  0x4d   : > { %247 = vmatpush.msra.mxu0 %v212_v15  ;;  %389 = vmatpush.msra.mxu1 %v212_v15 }
  0x4e   : > { %248 = vmatmul.f32.vlgmr.msra.gmra.mxu0 %v210_v16  ;;  %251 = vmatmul.f32.vlgmr.msra.gmra.mxu1 %v211_v17 }
  0xcb   : > { %v249_v19 = vpop.f32.mrf.mxu0  ;;  %v252_v20 = vpop.f32.mrf.mxu1 }
  0xcc   : > { %v250_v21 = vadd.f32 %v451_v18, %v249_v19  ;;  %v253_v22 = vadd.f32 %v451_v18, %v252_v20 }
  0xce   : > { %255 = vst [vmem:[%s207_s22] sm:$0xff] %v250_v21 }
  0xcf   : > { %256 = vst [vmem:[%s207_s22 + $0x8] sm:$0xff] %v253_v22 }
  0xd0   : > { %539 = shalt.err (!%p536_p10)
}
  0xd1   : > { %s587_s6 = smov 128   ;;  %s588_s25 = smov 8  }
  0xd2   : > { %396 = dma.vmem_to_hbm [thread:$0]  (%p678_p3), %s271_s24, 256, %s273_s29, %s258_s16, %s587_s6, %s587_s6, %s588_s25  }
  0xd3 PF: > { %s287_s18 = sand.u32 1, %s570_s12   ;;  %p773_p12 = scmp.ge.s32.totalorder %s582_s15, 2 }
  0xd4   : > { %s288_s23 = scalar_lea.sflag [#allocation4], %s287_s18 }
  0xd5   : > { %p407_p13 = pnand %p773_p12, %p644_p6 }
  0xd7   : > { %p408_p0 = pneg %p407_p13 }
  0xd9   : > { %565 = dma.done.wait (%p408_p0), %s288_s23, 256  }
  0xda   : > { %567 = vsyncadd (%p408_p0), %s288_s23, 4294967040  ;;  %p17_p5 = scmp.ge.s32.totalorder %s662_s26, 4   ;;  %s774_s12 = smov %s574_s13 }
  0xdb   : > { %s775_s13 = smov %s578_s14  ;;  %s776_s14 = smov %s674_s4 }
  0xdc   : > { %s777_s15 = smov %s662_s26  ;;  %19 = sbr.rel (!%p17_p5) target bundleno = 6 (0x6), region = 81 }
  0xe1   :  { %294 = vsyncpa [#allocation3], 1 }
  0xe2   :  { %296 = vsyncpa [#allocation3 + $0x1], 1 }
  0xe3   :  { %297 = vsyncpa [#allocation6], 1 }
  0xe4   :  { %298 = vsyncpa [#allocation4], 1 }
  0xe5   :  { %300 = vsyncpa [#allocation4 + $0x1], 1 }

</bundles_post_ra>
